<compile_context>
chip_gen: v5e
topology: v5e:2x2
jax: 0.10.0
libtpu: 0.0.40
codegen_flags: <defaults>
</compile_context>

<pallas_src>
import math
from typing import NamedTuple, Optional

import jax
import jax.numpy as jnp
from jax.experimental import pallas as pl
from jax.experimental.pallas import tpu as pltpu

_INV_SQRT2 = 1.0 / math.sqrt(2.0)


def _round_up(x, m):
    return ((x + m - 1) // m) * m


def _vmem_capacity_bytes():
    try:
        info = pltpu.get_tpu_info()
        cap = int(getattr(info, "vmem_capacity_bytes", 0) or 0)
        if cap > 0:
            return cap
    except Exception:
        pass
    return 64 * 1024 * 1024  # conservative fallback (v7x per-TC size)


def _vmem_limit_bytes():
    # Leave headroom under physical VMEM for Mosaic internal scratch,
    # semaphores and double buffers (v7x: ~54 of 64 MiB; v5e/v6e: ~108 of 128).
    return int(_vmem_capacity_bytes() * 0.85)


def _gelu_exact(g):
    # Exact (erf) GELU, matching PyTorch F.gelu default.
    return 0.5 * g * (1.0 + jax.lax.erf(g * _INV_SQRT2))


# ----------------------------------------------------------------------------
# Kernels
# ----------------------------------------------------------------------------
def _ffn_kernel_resident(x_ref, w1_ref, b1_ref, w2_ref, b2_ref, o_ref):
    # Full weights resident in VMEM; grid only over row tiles.
    # x_ref: (tm, dim_p); w1_ref: (dim_p, 2*hidden_p) laid out [Wa | Wg];
    # w2_ref: (hidden_p, dim_p).
    hp = w2_ref.shape[0]
    hg = jnp.dot(x_ref[...], w1_ref[...], preferred_element_type=jnp.float32)
    hg = hg + b1_ref[...].astype(jnp.float32)
    a, g = hg[:, :hp], hg[:, hp:]                      # 128-aligned split
    act = (a * _gelu_exact(g)).astype(w2_ref.dtype)
    out = jnp.dot(act, w2_ref[...], preferred_element_type=jnp.float32)
    o_ref[...] = (out + b2_ref[...].astype(jnp.float32)).astype(o_ref.dtype)


def _ffn_kernel_tiled(x_ref, w1_ref, b1_ref, w2_ref, b2_ref, o_ref, acc_ref):
    # Hidden dimension tiled over grid axis 1 with an f32 VMEM accumulator.
    # w1_ref: (dim_p, 2*th) laid out [Wa_h | Wg_h]; w2_ref: (th, dim_p).
    th = w2_ref.shape[0]

    @pl.when(pl.program_id(1) == 0)
    def _init():
        acc_ref[...] = jnp.zeros_like(acc_ref)

    hg = jnp.dot(x_ref[...], w1_ref[...], preferred_element_type=jnp.float32)
    hg = hg + b1_ref[...].astype(jnp.float32)
    a, g = hg[:, :th], hg[:, th:]                      # 128-aligned split
    act = (a * _gelu_exact(g)).astype(w2_ref.dtype)
    acc_ref[...] += jnp.dot(act, w2_ref[...], preferred_element_type=jnp.float32)

    @pl.when(pl.program_id(1) == pl.num_programs(1) - 1)
    def _finish():
        o_ref[...] = (acc_ref[...] + b2_ref[...].astype(jnp.float32)
                      ).astype(o_ref.dtype)


# ----------------------------------------------------------------------------
# One-time weight preparation (hoisted out of the per-call path)
# ----------------------------------------------------------------------------
class FFNParams(NamedTuple):
    w1c: jax.Array   # (dim_p, 2*hidden_p), per-tile [Wa_h | Wg_h] layout
    b1c: jax.Array   # (1, 2*hidden_p)
    w2p: jax.Array   # (hidden_p, dim_p)
    b2p: jax.Array   # (1, dim_p)
    dim: int
    hidden: int
    dim_p: int
    hidden_p: int
    th: int


def prepare_ffn_params(w1, b1, w2, b2, *, th: Optional[int] = None,
                       param_dtype=None) -> FFNParams:
    """Split/pad/relayout the FFN weights once.  `param_dtype=jnp.bfloat16`
    gives bf16 MXU operands (f32 accumulation is kept inside the kernel)."""
    dim, two_hidden = w1.shape
    hidden = two_hidden // 2
    assert w1.shape == (dim, 2 * hidden)
    assert b1.shape == (2 * hidden,)
    assert w2.shape == (hidden, dim)
    assert b2.shape == (dim,)

    if param_dtype is not None:
        w1 = w1.astype(param_dtype)
        b1 = b1.astype(param_dtype)
        w2 = w2.astype(param_dtype)
        b2 = b2.astype(param_dtype)

    dim_p = _round_up(dim, 128)
    hidden_p = _round_up(hidden, 128)
    w_bytes = w1.dtype.itemsize

    if th is None:
        # Keep full W1+W2 resident (single hidden tile, no accumulator) when
        # they fit comfortably in VMEM; otherwise tile the hidden dimension.
        full_w_bytes = 3 * dim_p * hidden_p * w_bytes
        if full_w_bytes <= 0.35 * _vmem_limit_bytes():
            th = hidden_p
        else:
            th = next(c for c in (1024, 512, 256, 128) if hidden_p % c == 0)
    assert hidden_p % th == 0 and th % 128 == 0
    n_h = hidden_p // th

    # GEGLU halves (value half first, gate half second == torch.chunk(2, -1)).
    wa = jnp.pad(w1[:, :hidden], ((0, dim_p - dim), (0, hidden_p - hidden)))
    wg = jnp.pad(w1[:, hidden:], ((0, dim_p - dim), (0, hidden_p - hidden)))
    ba = jnp.pad(b1[:hidden], (0, hidden_p - hidden))
    bg = jnp.pad(b1[hidden:], (0, hidden_p - hidden))

    # Per-tile interleave so one contiguous (dim_p, 2*th) block holds
    # [Wa_h | Wg_h]: the first linear becomes a single MXU matmul per tile.
    w1c = jnp.concatenate(
        [wa.reshape(dim_p, n_h, th), wg.reshape(dim_p, n_h, th)], axis=-1
    ).reshape(dim_p, 2 * hidden_p)
    b1c = jnp.concatenate(
        [ba.reshape(n_h, th), bg.reshape(n_h, th)], axis=-1
    ).reshape(1, 2 * hidden_p)
    w2p = jnp.pad(w2, ((0, hidden_p - hidden), (0, dim_p - dim)))
    b2p = jnp.pad(b2, (0, dim_p - dim)).reshape(1, dim_p)

    return FFNParams(w1c, b1c, w2p, b2p, dim, hidden, dim_p, hidden_p, th)


# ----------------------------------------------------------------------------
# Forward pass
# ----------------------------------------------------------------------------
def feed_forward(x, params: FFNParams, *, tm: int = 512):
    """x: (batch, seq, dim); params from prepare_ffn_params."""
    batch, seq, dim = x.shape
    assert dim == params.dim
    dim_p, hidden_p, th = params.dim_p, params.hidden_p, params.th
    n_h = hidden_p // th
    out_dtype = x.dtype
    compute_dtype = params.w1c.dtype
    w_bytes = jnp.dtype(compute_dtype).itemsize
    io_bytes = jnp.dtype(compute_dtype).itemsize + jnp.dtype(out_dtype).itemsize

    vmem_limit = _vmem_limit_bytes()

    M = batch * seq
    m8 = _round_up(M, 8)
    tm_eff = min(tm, m8)

    def vmem_est(t):
        wtile = (dim_p * 2 * th + th * dim_p + 2 * th + dim_p) * w_bytes
        wbuf = wtile if n_h == 1 else 2 * wtile   # constant-index blocks: no refetch
        io = 2 * t * dim_p * io_bytes             # double-buffered x + out tiles
        inter = t * 2 * th * 4                    # f32 (a|g) intermediate
        acc = 0 if n_h == 1 else t * dim_p * 4
        return wbuf + io + inter + acc

    while tm_eff > 8 and vmem_est(tm_eff) > 0.8 * vmem_limit:
        tm_eff = max(8, _round_up(tm_eff // 2, 8))

    # Guarantee >= 2 row tiles so the "parallel" axis spans both v7x cores.
    if M > 8 and m8 // tm_eff < 2:
        tm_eff = _round_up((m8 + 1) // 2, 8)

    M_pad = _round_up(M, tm_eff)
    rows = M_pad // tm_eff

    x2d = x.reshape(M, dim)
    if x2d.dtype != compute_dtype:
        x2d = x2d.astype(compute_dtype)
    if M_pad != M or dim_p != dim:                # skip pad in the aligned case
        x2d = jnp.pad(x2d, ((0, M_pad - M), (0, dim_p - dim)))

    compiler_params = pltpu.CompilerParams(
        dimension_semantics=("parallel",) if n_h == 1 else ("parallel", "arbitrary"),
        vmem_limit_bytes=vmem_limit)

    if n_h == 1:
        grid_spec = pltpu.PrefetchScalarGridSpec(
            num_scalar_prefetch=0,
            grid=(rows,),
            in_specs=[
                pl.BlockSpec((tm_eff, dim_p), lambda i: (i, 0)),        # x tile
                pl.BlockSpec((dim_p, 2 * hidden_p), lambda i: (0, 0)),  # W1 (resident)
                pl.BlockSpec((1, 2 * hidden_p), lambda i: (0, 0)),      # b1
                pl.BlockSpec((hidden_p, dim_p), lambda i: (0, 0)),      # W2 (resident)
                pl.BlockSpec((1, dim_p), lambda i: (0, 0)),             # b2
            ],
            out_specs=pl.BlockSpec((tm_eff, dim_p), lambda i: (i, 0)),
        )
        kernel = _ffn_kernel_resident
    else:
        grid_spec = pltpu.PrefetchScalarGridSpec(
            num_scalar_prefetch=0,
            grid=(rows, n_h),
            in_specs=[
                pl.BlockSpec((tm_eff, dim_p), lambda i, h: (i, 0)),     # x tile
                pl.BlockSpec((dim_p, 2 * th), lambda i, h: (0, h)),     # [Wa_h|Wg_h]
                pl.BlockSpec((1, 2 * th), lambda i, h: (0, h)),         # [ba_h|bg_h]
                pl.BlockSpec((th, dim_p), lambda i, h: (h, 0)),         # W2 tile
                pl.BlockSpec((1, dim_p), lambda i, h: (0, 0)),          # b2
            ],
            out_specs=pl.BlockSpec((tm_eff, dim_p), lambda i, h: (i, 0)),
            scratch_shapes=[pltpu.VMEM((tm_eff, dim_p), jnp.float32)],
        )
        kernel = _ffn_kernel_tiled

    out2d = pl.pallas_call(
        kernel,
        out_shape=jax.ShapeDtypeStruct((M_pad, dim_p), out_dtype),
        grid_spec=grid_spec,
        compiler_params=compiler_params,
    )(x2d, params.w1c, params.b1c, params.w2p, params.b2p)

    if M_pad != M or dim_p != dim:
        out2d = out2d[:M, :dim]
    return out2d.reshape(batch, seq, dim)


# ----------------------------------------------------------------------------
# Reference + self-test
# ----------------------------------------------------------------------------
def reference_feed_forward(x, w1, b1, w2, b2):
    h = jnp.einsum("bsd,dh->bsh", x, w1) + b1
    hidden = h.shape[-1] // 2
    a, g = h[..., :hidden], h[..., hidden:]
    act = a * jax.nn.gelu(g, approximate=False)
    return jnp.einsum("bsh,hd->bsd", act, w2) + b2


def _make_params(key, dim, mult):
    hidden = dim * mult
    kw1, kb1, kw2, kb2 = jax.random.split(key, 4)
    bound1 = 1.0 / math.sqrt(dim)
    w1 = jax.random.uniform(kw1, (dim, hidden * 2), jnp.float32, -bound1, bound1)
    b1 = jax.random.uniform(kb1, (hidden * 2,), jnp.float32, -bound1, bound1)
    bound2 = 1.0 / math.sqrt(hidden)
    w2 = jax.random.uniform(kw2, (hidden, dim), jnp.float32, -bound2, bound2)
    b2 = jax.random.uniform(kb2, (dim,), jnp.float32, -bound2, bound2)
    return w1, b1, w2, b2


if __name__ == "__main__":
    key = jax.random.PRNGKey(0)
    k1, k2, kx1, kx2 = jax.random.split(key, 4)

    # Case 1: dim=32, mult=4 (hidden=128) -> resident-weight fast path.
    batch, seq, dim, mult = 2, 8, 32, 4
    w1, b1, w2, b2 = _make_params(k1, dim, mult)
    x = jax.random.normal(kx1, (batch, seq, dim), dtype=jnp.float32)
    params = prepare_ffn_params(w1, b1, w2, b2)
    out = jax.block_until_ready(feed_forward(x, params))
    ref = reference_feed_forward(x, w1, b1, w2, b2)
    assert out.shape == (batch, seq, dim)
    assert jnp.allclose(out, ref, atol=2e-5, rtol=2e-5), "resident path mismatch"

    # Case 2: dim=64, mult=4 (hidden=256), forced th=128 -> tiled/accumulator path.
    dim2 = 64
    w1b, b1b, w2b, b2b = _make_params(k2, dim2, mult)
    xb = jax.random.normal(kx2, (batch, seq, dim2), dtype=jnp.float32)
    params_b = prepare_ffn_params(w1b, b1b, w2b, b2b, th=128)
    out_b = jax.block_until_ready(feed_forward(xb, params_b))
    ref_b = reference_feed_forward(xb, w1b, b1b, w2b, b2b)
    assert out_b.shape == (batch, seq, dim2)
    assert jnp.allclose(out_b, ref_b, atol=2e-5, rtol=2e-5), "tiled path mismatch"

    print("KERNEL_OK")
</pallas_src>

<mosaic_0001>
module attributes {stable_mosaic.version = 11 : i64} {
  func.func @_ffn_kernel_resident(%arg0: i32, %arg1: memref<8x128xf32, #tpu.memory_space<vmem>>, %arg2: memref<128x256xf32, #tpu.memory_space<vmem>>, %arg3: memref<1x256xf32, #tpu.memory_space<vmem>>, %arg4: memref<128x128xf32, #tpu.memory_space<vmem>>, %arg5: memref<1x128xf32, #tpu.memory_space<vmem>>, %arg6: memref<8x128xf32, #tpu.memory_space<vmem>>) attributes {dimension_semantics = [#tpu.dimension_semantics<parallel>], iteration_bounds = array<i64: 2>, scalar_prefetch = 0 : i64, scratch_operands = 0 : i64, tpu.core_type = #tpu.core_type<tc>, window_params = [{transform_indices = @transform_0, window_bounds = array<i64: 8, 128>}, {pipeline_mode = #tpu.pipeline_mode<synchronous>, transform_indices = @transform_1, window_bounds = array<i64: 128, 256>}, {pipeline_mode = #tpu.pipeline_mode<synchronous>, transform_indices = @transform_2, window_bounds = array<i64: 1, 256>}, {pipeline_mode = #tpu.pipeline_mode<synchronous>, transform_indices = @transform_3, window_bounds = array<i64: 128, 128>}, {pipeline_mode = #tpu.pipeline_mode<synchronous>, transform_indices = @transform_4, window_bounds = array<i64: 1, 128>}, {transform_indices = @transform_5, window_bounds = array<i64: 8, 128>}]} {
    %c0 = arith.constant 0 : index
    %c0_0 = arith.constant 0 : index
    %0 = vector.load %arg1[%c0, %c0_0] : memref<8x128xf32, #tpu.memory_space<vmem>>, vector<8x128xf32>
    %c0_1 = arith.constant 0 : index
    %c0_2 = arith.constant 0 : index
    %1 = vector.load %arg2[%c0_1, %c0_2] : memref<128x256xf32, #tpu.memory_space<vmem>>, vector<128x256xf32>
    %cst = arith.constant dense<0.000000e+00> : vector<8x256xf32>
    %2 = tpu.matmul %0, %1, %cst {dimension_numbers = #tpu.dot_dimension_numbers<[1], [0], [0], [1], [0, 0, 1, 1], [], []>} : vector<8x128xf32>, vector<128x256xf32>, vector<8x256xf32> -> vector<8x256xf32>
    %c0_3 = arith.constant 0 : index
    %c0_4 = arith.constant 0 : index
    %3 = vector.load %arg3[%c0_3, %c0_4] : memref<1x256xf32, #tpu.memory_space<vmem>>, vector<1x256xf32>
    %4 = vector.broadcast %3 : vector<1x256xf32> to vector<8x256xf32>
    %5 = arith.addf %2, %4 : vector<8x256xf32>
    %6 = vector.extract_strided_slice %5 {offsets = [0, 0], sizes = [8, 128], strides = [1, 1]} : vector<8x256xf32> to vector<8x128xf32>
    %7 = vector.extract_strided_slice %5 {offsets = [0, 128], sizes = [8, 128], strides = [1, 1]} : vector<8x256xf32> to vector<8x128xf32>
    %cst_5 = arith.constant 5.000000e-01 : f32
    %8 = vector.broadcast %cst_5 : f32 to vector<8x128xf32>
    %9 = arith.mulf %8, %7 : vector<8x128xf32>
    %cst_6 = arith.constant 0.707106769 : f32
    %10 = vector.broadcast %cst_6 : f32 to vector<8x128xf32>
    %11 = arith.mulf %7, %10 : vector<8x128xf32>
    %12 = math.erf %11 : vector<8x128xf32>
    %cst_7 = arith.constant 1.000000e+00 : f32
    %13 = vector.broadcast %cst_7 : f32 to vector<8x128xf32>
    %14 = arith.addf %13, %12 : vector<8x128xf32>
    %15 = arith.mulf %9, %14 : vector<8x128xf32>
    %16 = arith.mulf %6, %15 : vector<8x128xf32>
    %c0_8 = arith.constant 0 : index
    %c0_9 = arith.constant 0 : index
    %17 = vector.load %arg4[%c0_8, %c0_9] : memref<128x128xf32, #tpu.memory_space<vmem>>, vector<128x128xf32>
    %cst_10 = arith.constant dense<0.000000e+00> : vector<8x128xf32>
    %18 = tpu.matmul %16, %17, %cst_10 {dimension_numbers = #tpu.dot_dimension_numbers<[1], [0], [0], [1], [0, 0, 1, 1], [], []>} : vector<8x128xf32>, vector<128x128xf32>, vector<8x128xf32> -> vector<8x128xf32>
    %c0_11 = arith.constant 0 : index
    %c0_12 = arith.constant 0 : index
    %19 = vector.load %arg5[%c0_11, %c0_12] : memref<1x128xf32, #tpu.memory_space<vmem>>, vector<1x128xf32>
    %20 = vector.broadcast %19 : vector<1x128xf32> to vector<8x128xf32>
    %21 = arith.addf %18, %20 : vector<8x128xf32>
    %c0_13 = arith.constant 0 : index
    %c0_14 = arith.constant 0 : index
    %22 = vector.load %arg6[%c0_13, %c0_14] : memref<8x128xf32, #tpu.memory_space<vmem>>, vector<8x128xf32>
    tpu.vector_store %arg6[%c0_13, %c0_14], %21 {strides = array<i32>} : memref<8x128xf32, #tpu.memory_space<vmem>>, vector<8x128xf32>,
    return
  }
  func.func @transform_0(%arg0: i32) -> (i32, i32) {
    %c0_i32 = arith.constant 0 : i32
    %c0_i32_0 = arith.constant 0 : i32
    return %arg0, %c0_i32 : i32, i32
  }
  func.func @transform_1(%arg0: i32) -> (i32, i32) {
    %c0_i32 = arith.constant 0 : i32
    %c0_i32_0 = arith.constant 0 : i32
    %c0_i32_1 = arith.constant 0 : i32
    return %c0_i32, %c0_i32_0 : i32, i32
  }
  func.func @transform_2(%arg0: i32) -> (i32, i32) {
    %c0_i32 = arith.constant 0 : i32
    %c0_i32_0 = arith.constant 0 : i32
    %c0_i32_1 = arith.constant 0 : i32
    return %c0_i32, %c0_i32_0 : i32, i32
  }
  func.func @transform_3(%arg0: i32) -> (i32, i32) {
    %c0_i32 = arith.constant 0 : i32
    %c0_i32_0 = arith.constant 0 : i32
    %c0_i32_1 = arith.constant 0 : i32
    return %c0_i32, %c0_i32_0 : i32, i32
  }
  func.func @transform_4(%arg0: i32) -> (i32, i32) {
    %c0_i32 = arith.constant 0 : i32
    %c0_i32_0 = arith.constant 0 : i32
    %c0_i32_1 = arith.constant 0 : i32
    return %c0_i32, %c0_i32_0 : i32, i32
  }
  func.func @transform_5(%arg0: i32) -> (i32, i32) {
    %c0_i32 = arith.constant 0 : i32
    %c0_i32_0 = arith.constant 0 : i32
    return %arg0, %c0_i32 : i32, i32
  }
}

</mosaic_0001>

<bundles_post_ra>
// kernel: tpu_custom_call.1
= control target key start
LH: loop header
LB: loop body
LE: loop exit
PB: predicated region body
PF: predicated region fallthrough
CT: control target
= control target key end

     0   :  { %10 = vsyncpa [#allocation3], 0  ;;  %s1080_s0 = inlined_call_operand.hbm [shape: f32[16,128], index: 0, kind: input, shape index: {}]   ;;  %s1081_s1 = inlined_call_operand.hbm [shape: f32[128,256], index: 1, kind: input, shape index: {}]   ;;  %s1082_s2 = inlined_call_operand.hbm [shape: f32[1,256], index: 2, kind: input, shape index: {}]   ;;  %s1083_s3 = inlined_call_operand.hbm [shape: f32[128,128], index: 3, kind: input, shape index: {}]   ;;  %s1084_s4 = inlined_call_operand.vmem [shape: f32[1,128], index: 4, kind: input, shape index: {}]   ;;  %s1085_s5 = inlined_call_operand.hbm [shape: f32[16,128], index: 5, kind: output, shape index: {}]  }
   0x1   :  { %12 = vsyncpa [#allocation3 + $0x1], 0 }
   0x2   :  { %13 = vsyncpa [#allocation6], 0 }
   0x3   :  { %14 = vsyncpa [#allocation9], 0 }
   0x4   :  { %15 = vsyncpa [#allocation4], 0 }
   0x5   :  { %17 = vsyncpa [#allocation4 + $0x1], 0  ;;  %s906_s18 = smov 0   ;;  %s908_s19 = smov 0  }
   0x6   :  { %s910_s20 = smov 0   ;;  %s912_s21 = smov 0  }
   0x7 LB: > { %s175_s24 = sshll.u32 %s1081_s1, 4  ;;  %s930_s25 = sadd.s32 4294967295, %s867_s21   ;;  %s867_s21 = sphi %s912_s21, %s1096_s21   ;;  %s863_s20 = sphi %s910_s20, %s1095_s20   ;;  %s859_s19 = sphi %s908_s19, %s1094_s19   ;;  %s855_s18 = sphi %s906_s18, %s1093_s18   ;;  %s176_s24 = int_to_ptr.hbm [resolvable:$true] %s175_s24 }
   0x8   : > { %p571_p0 = scmp.ge.s32.totalorder %s867_s21, 1  ;;  %p44_p1 = scmp.eq.s32.totalorder %s930_s25, 0 }
   0x9   : > { %p164_p2 = scmp.lt.s32.totalorder %s867_s21, 3  ;;  %s869_s27 = smov [#allocation5]  }
   0xa   : > { %s177_s28 = sshll.u32 %s869_s27, 4  ;;  %s190_s6 = sshll.u32 %s1082_s2, 4  ;;  %s178_s28 = int_to_ptr.vmem [resolvable:$true] %s177_s28  ;;  %s191_s6 = int_to_ptr.hbm [resolvable:$true] %s190_s6 }
   0xb   : > { %p935_p3 = pnand %p571_p0, %p164_p2  ;;  %s201_s10 = sshll.u32 %s1083_s3, 4  ;;  %s202_s10 = int_to_ptr.hbm [resolvable:$true] %s201_s10 }
   0xc   : > { %s870_s11 = smov [#allocation7]   ;;  %s871_s13 = smov 256  }
   0xd   : > { %p605_p4 = pneg %p935_p3  ;;  %s192_s12 = sshll.u32 %s870_s11, 4  ;;  %s193_s12 = int_to_ptr.vmem [resolvable:$true] %s192_s12 }
   0xe   : > { %s872_s14 = smov 16   ;;  %s873_s15 = smov [#allocation8]  }
   0xf   : > { %p947_p6 = pnand %p605_p4, %p44_p1  ;;  %s203_s16 = sshll.u32 %s873_s15, 4  ;;  %s204_s16 = int_to_ptr.vmem [resolvable:$true] %s203_s16 }
  0x10   : > { %s874_s17 = smov 128   ;;  %s875_s22 = smov 8  }
  0x11   : > { %608 = dma.hbm_to_vmem [thread:$0]  (!%p947_p6), %s176_s24, 4096, %s178_s28, [#allocation6], %s871_s13, %s871_s13, %s872_s14  }
  0x12   : > { %611 = dma.hbm_to_vmem [thread:$0]  (!%p947_p6), %s191_s6, 32, %s193_s12, [#allocation6]  }
  0x13   : > { %614 = dma.hbm_to_vmem [thread:$0]  (!%p947_p6), %s202_s10, 2048, %s204_s16, [#allocation9], %s874_s17, %s874_s17, %s875_s22  }
  0x14   : > { %s570_s23 = sadd.s32 4294967294, %s867_s21   ;;  %s962_s24 = sadd.s32 1, %s867_s21  }
  0x15   : > { %s30_s27 = sadd.s32 1, %s863_s20  ;;  %s27_s28 = ssub.s32 %s867_s21, %s962_s24 }
  0x16   : > { %p37_p7 = scmp.ne.s32.totalorder %s863_s20, %s859_s19  ;;  %p28_p8 = scmp.eq.s32.totalorder %s27_s28, 0 }
  0x17   : > { %p38_p9 = scmp.eq.s32.totalorder %s867_s21, 0  ;;  %p43_p10 = scmp.ne.s32.totalorder %s859_s19, %s855_s18 }
  0x18   : > { %p151_p11 = scmp.eq.s32.totalorder %s930_s25, 1  ;;  %p157_p0 = scmp.eq.s32.totalorder %s570_s23, 1 }
  0x19   : > { %s974_s29 = scalar_select %p28_p8, %s863_s20, %s30_s27  }
  0x1a   : > { %p978_p12 = por %p44_p1, %p43_p10  ;;  %p982_p13 = por %p151_p11, %p37_p7 }
  0x1b   : > { %p39_p2 = por %p38_p9, %p37_p7  ;;  %s220_s7 = sand.u32 1, %s863_s20  }
  0x1c   : > { %p987_p4 = por %p157_p0, %p43_p10  ;;  %p626_p6 = scmp.lt.s32.totalorder %s867_s21, 2 }
  0x1d   : > { %s576_s9 = sshll.u32 %s220_s7, 3  ;;  %s577_s10 = sshll.u32 %s867_s21, 3 }
  0x1e   : > { %s228_s13 = scalar_lea.hbm %s1080_s0, %s577_s10  ;;  %s224_s15 = scalar_lea.vmem [#allocation2], %s576_s9 }
  0x1f   : > { %s230_s14 = sshll.u32 %s228_s13, 4  ;;  %s232_s16 = sshll.u32 %s224_s15, 4  ;;  %s231_s14 = int_to_ptr.hbm [resolvable:$true] %s230_s14  ;;  %s233_s16 = int_to_ptr.vmem [resolvable:$true] %s232_s16 }
  0x20   : > { %p996_p8 = pnand %p626_p6, %p39_p2  ;;  %s221_s22 = scalar_lea.sflag [#allocation3], %s220_s7 }
  0x21   : > { %s763_s23 = sshra.s32 %s231_s14, 4  ;;  %s770_s9 = scalar_lea.hbm %s1080_s0, 16  ;;  %s764_s23 = int_to_ptr.hbm [resolvable:$true] %s763_s23 }
  0x22   : > { %s765_s27 = scalar_lea.hbm %s764_s23, 8  ;;  %p767_p9 = pneg %p996_p8 }
  0x23   : > { %p766_p7 = scmp.ne.s32.totalorder %s764_s23, %s765_s27  ;;  %p771_p0 = scmp.lt.s32.totalorder %s764_s23, %s1080_s0 }
  0x24   : > { %p772_p2 = scmp.lt.s32.totalorder %s770_s9, %s765_s27 }
  0x25   : > { %p768_p10 = pnand %p767_p9, %p766_p7 }
  0x26   : > { %p773_p6 = por %p772_p2, %p771_p0 }
  0x27   : > { %p769_p11 = pneg %p768_p10 }
  0x29   : > { %p774_p5 = pnand %p773_p6, %p769_p11 }
  0x2b   : > { %777 = shalt.err (!%p774_p5)
}
  0x2c   : > { %618 = dma.hbm_to_vmem [thread:$0]  (!%p996_p8), %s231_s14, 128, %s233_s16, %s221_s22  }
  0x2d   : > { %241 = sbr.rel (%p935_p3) target bundleno = 405 (0x195), region = 40  ;;  %s1013_s7 = sand.u32 (!%p935_p3), 1, %s859_s19  }
  0x2e   : > { %s579_s13 = sshll.u32 (!%p935_p3), %s1013_s7, 3  ;;  %s244_s15 = scalar_lea.sflag (!%p935_p3), [#allocation3], %s1013_s7 }
  0x2f   : > { %s1019_s23 = scalar_lea.vmem (!%p935_p3), [#allocation2], %s579_s13 }
  0x32   : > { %838 = dma.done.wait (%p978_p12), %s244_s15, 128  }
  0x33   : > { %840 = vsyncadd (%p978_p12), %s244_s15, 4294967168 }
  0x34   : > { %842 = dma.done.wait (%p44_p1), [#allocation6], 4128  }
  0x35   : > { %844 = vsyncadd (%p44_p1), [#allocation6], 4294963168 }
  0x36   : > { %846 = dma.done.wait (%p44_p1), [#allocation9], 2048  }
  0x37   : > { %848 = vsyncadd (%p44_p1), [#allocation9], 4294965248  ;;  %v322_v0 = vld [vmem:[#allocation5 + $0xf8] sm:$0xff]  ;;  %v320_v1 = vld [vmem:[#allocation5 + $0xe8] sm:$0xff]  ;;  %s586_s26 = sshll.u32 %s930_s25, 3  ;;  %s289_s27 = scalar_lea.vmem [#allocation10], %s579_s13 }
  0x38   : > { %349 = vmatpush.msra.mxu1 %v322_v0  ;;  %v318_v2 = vld [vmem:[#allocation5 + $0xd8] sm:$0xff]  ;;  %v316_v3 = vld [vmem:[#allocation5 + $0xc8] sm:$0xff]  ;;  %v321_v4 = vld [vmem:[#allocation5 + $0xf0] sm:$0xff]  ;;  %s466_s16 = scalar_lea.hbm %s1085_s5, %s586_s26  ;;  %s468_s28 = sshll.u32 %s289_s27, 4  ;;  %s469_s28 = int_to_ptr.vmem [resolvable:$true] %s468_s28 }
  0x39   : > { %v314_v5 = vld [vmem:[#allocation5 + $0xb8] sm:$0xff]  ;;  %329 = vmatpush.msra.mxu0 %v321_v4  ;;  %v319_v6 = vld [vmem:[#allocation5 + $0xe0] sm:$0xff]  ;;  %v317_v7 = vld [vmem:[#allocation5 + $0xd0] sm:$0xff]  ;;  %s470_s10 = sshll.u32 %s466_s16, 4  ;;  %s456_s9 = scalar_lea.sflag [#allocation4], %s1013_s7  ;;  %s471_s10 = int_to_ptr.hbm [resolvable:$true] %s470_s10 }
  0x3a   : > { %350 = vmatpush.msra.mxu1 %v320_v1  ;;  %v312_v8 = vld [vmem:[#allocation5 + $0xa8] sm:$0xff]  ;;  %v315_v9 = vld [vmem:[#allocation5 + $0xc0] sm:$0xff]  ;;  %v310_v10 = vld [vmem:[#allocation5 + $0x98] sm:$0xff]  ;;  %s807_s25 = sshra.s32 %s471_s10, 4  ;;  %s808_s25 = int_to_ptr.hbm [resolvable:$true] %s807_s25 }
  0x3b   : > { %330 = vmatpush.msra.mxu0 %v319_v6  ;;  %v313_v11 = vld [vmem:[#allocation5 + $0xb0] sm:$0xff]  ;;  %v308_v12 = vld [vmem:[#allocation5 + $0x88] sm:$0xff]  ;;  %v311_v13 = vld [vmem:[#allocation5 + $0xa0] sm:$0xff]  ;;  %s809_s11 = scalar_lea.hbm %s808_s25, 8  ;;  %p814_p12 = scmp.lt.s32.totalorder %s808_s25, %s1085_s5 }
  0x3c   : > { %351 = vmatpush.msra.mxu1 %v318_v2  ;;  %v306_v14 = vld [vmem:[#allocation5 + $0x78] sm:$0xff]  ;;  %v309_v15 = vld [vmem:[#allocation5 + $0x90] sm:$0xff]  ;;  %v304_v16 = vld [vmem:[#allocation5 + $0x68] sm:$0xff]  ;;  %p810_p1 = scmp.ne.s32.totalorder %s808_s25, %s809_s11 }
  0x3d   : > { %331 = vmatpush.msra.mxu0 %v317_v7  ;;  %v307_v17 = vld [vmem:[#allocation5 + $0x80] sm:$0xff]  ;;  %v302_v18 = vld [vmem:[#allocation5 + $0x58] sm:$0xff]  ;;  %v305_v19 = vld [vmem:[#allocation5 + $0x70] sm:$0xff] }
  0x3e   : > { %352 = vmatpush.msra.mxu1 %v316_v3  ;;  %v300_v20 = vld [vmem:[#allocation5 + $0x48] sm:$0xff]  ;;  %v303_v21 = vld [vmem:[#allocation5 + $0x60] sm:$0xff]  ;;  %v298_v22 = vld [vmem:[#allocation5 + $0x38] sm:$0xff]  ;;  %p811_p3 = pnand %p810_p1, %p982_p13 }
  0x3f   : > { %332 = vmatpush.msra.mxu0 %v315_v9  ;;  %v301_v23 = vld [vmem:[#allocation5 + $0x50] sm:$0xff]  ;;  %v296_v24 = vld [vmem:[#allocation5 + $0x28] sm:$0xff]  ;;  %v299_v25 = vld [vmem:[#allocation5 + $0x40] sm:$0xff] }
  0x40   : > { %353 = vmatpush.msra.mxu1 %v314_v5  ;;  %v294_v26 = vld [vmem:[#allocation5 + $0x18] sm:$0xff]  ;;  %v297_v27 = vld [vmem:[#allocation5 + $0x30] sm:$0xff]  ;;  %v292_v28 = vld [vmem:[#allocation5 + $0x8] sm:$0xff]  ;;  %p812_p5 = pneg %p811_p3 }
  0x41   : > { %333 = vmatpush.msra.mxu0 %v313_v11  ;;  %v290_v29 = vld [vmem:[%s1019_s23] sm:$0xff]  ;;  %v295_v30 = vld [vmem:[#allocation5 + $0x20] sm:$0xff]  ;;  %s813_s23 = scalar_lea.hbm %s1085_s5, 16 }
  0x42   : > { %354 = vmatpush.msra.mxu1 %v312_v8  ;;  %v293_v31 = vld [vmem:[#allocation5 + $0x10] sm:$0xff]  ;;  %v291_v32 = vld [vmem:[#allocation5] sm:$0xff]  ;;  %p815_p8 = scmp.lt.s32.totalorder %s813_s23, %s809_s11 }
  0x43   : > { %334 = vmatpush.msra.mxu0 %v311_v13  ;;  %v429_v33 = vld [vmem:[#allocation8 + $0x78] sm:$0xff]  ;;  %v428_v35 = vld [vmem:[#allocation8 + $0x70] sm:$0xff]  ;;  %v427_v36 = vld [vmem:[#allocation8 + $0x68] sm:$0xff] }
  0x44   : > { %355 = vmatpush.msra.mxu1 %v310_v10  ;;  %434 = vmatpush.msra.mxu2 %v429_v33  ;;  %v1034_v34 = vld [vmem:[#allocation7] sm:$0x3]  ;;  %v426_v38 = vld [vmem:[#allocation8 + $0x60] sm:$0xff]  ;;  %v424_v41 = vld [vmem:[#allocation8 + $0x50] sm:$0xff]  ;;  %p816_p7 = por %p815_p8, %p814_p12 }
  0x45   : > { %335 = vmatpush.msra.mxu0 %v309_v15  ;;  %v326_v37 = vperm.slane %v1034_v34, 1  ;;  %v425_v39 = vld [vmem:[#allocation8 + $0x58] sm:$0xff]  ;;  %v423_v43 = vld [vmem:[#allocation8 + $0x48] sm:$0xff]  ;;  %v422_v45 = vld [vmem:[#allocation8 + $0x40] sm:$0xff] }
  0x46   : > { %356 = vmatpush.msra.mxu1 %v308_v12  ;;  %435 = vmatpush.msra.mxu2 %v428_v35  ;;  %v421_v47 = vld [vmem:[#allocation8 + $0x38] sm:$0xff]  ;;  %v420_v49 = vld [vmem:[#allocation8 + $0x30] sm:$0xff]  ;;  %v419_v52 = vld [vmem:[#allocation8 + $0x28] sm:$0xff]  ;;  %p817_p9 = pnand %p816_p7, %p812_p5 }
  0x47   : > { %336 = vmatpush.msra.mxu0 %v307_v17  ;;  %v418_v55 = vld [vmem:[#allocation8 + $0x20] sm:$0xff]  ;;  %v417_v58 = vld [vmem:[#allocation8 + $0x18] sm:$0xff]  ;;  %v416_v61 = vld [vmem:[#allocation8 + $0x10] sm:$0xff] }
  0x48   : > { %357 = vmatpush.msra.mxu1 %v306_v14  ;;  %436 = vmatpush.msra.mxu2 %v427_v36  ;;  %v415_v63 = vld [vmem:[#allocation8 + $0x8] sm:$0xff]  ;;  %v414_v2 = vld [vmem:[#allocation8] sm:$0xff] }
  0x49   : > { %337 = vmatpush.msra.mxu0 %v305_v19 }
  0x4a   : > { %358 = vmatpush.msra.mxu1 %v304_v16  ;;  %437 = vmatpush.msra.mxu2 %v426_v38 }
  0x4b   : > { %338 = vmatpush.msra.mxu0 %v303_v21 }
  0x4c   : > { %359 = vmatpush.msra.mxu1 %v302_v18  ;;  %438 = vmatpush.msra.mxu2 %v425_v39 }
  0x4d   : > { %339 = vmatpush.msra.mxu0 %v301_v23  ;;  %v325_v23 = vperm.slane %v1034_v34, 0 }
  0x4e   : > { %360 = vmatpush.msra.mxu1 %v300_v20  ;;  %439 = vmatpush.msra.mxu2 %v424_v41 }
  0x4f   : > { %340 = vmatpush.msra.mxu0 %v299_v25 }
  0x50   : > { %361 = vmatpush.msra.mxu1 %v298_v22  ;;  %440 = vmatpush.msra.mxu2 %v423_v43 }
  0x51   : > { %341 = vmatpush.msra.mxu0 %v297_v27 }
  0x52   : > { %362 = vmatpush.msra.mxu1 %v296_v24  ;;  %441 = vmatpush.msra.mxu2 %v422_v45 }
  0x53   : > { %342 = vmatpush.msra.mxu0 %v295_v30 }
  0x54   : > { %363 = vmatpush.msra.mxu1 %v294_v26  ;;  %442 = vmatpush.msra.mxu2 %v421_v47 }
  0x55   : > { %343 = vmatpush.msra.mxu0 %v293_v31 }
  0x56   : > { %364 = vmatpush.msra.mxu1 %v292_v28  ;;  %443 = vmatpush.msra.mxu2 %v420_v49 }
  0x57   : > { %365 = vmatmul.f32.vlgmr.msra.gmra.mxu1 %v290_v29  ;;  %344 = vmatpush.msra.mxu0 %v291_v32  ;;  %v670_v32 = vld [vmem:[%s1084_s4] ss:$0 sm:$0xff] }
  0x58   : > { %345 = vmatmul.f32.vlgmr.msra.gmra.mxu0 %v290_v29  ;;  %444 = vmatpush.msra.mxu2 %v419_v52 }
  0x5a   : > { %445 = vmatpush.msra.mxu2 %v418_v55 }
  0x5c   : > { %446 = vmatpush.msra.mxu2 %v417_v58 }
  0x5e   : > { %447 = vmatpush.msra.mxu2 %v416_v61 }
  0x60   : > { %448 = vmatpush.msra.mxu2 %v415_v63 }
  0x62   : > { %449 = vmatpush.msra.mxu2 %v414_v2 }
  0xd4   : > { %v366_v40 = vpop.f32.mrf.mxu1 }
  0xd5   : > { %v1037_v42 = vadd.f32 %v366_v40, %v326_v37  ;;  %v346_v25 = vpop.f32.mrf.mxu0 }
  0xd6   : > { %v347_v28 = vadd.f32 %v346_v25, %v325_v23 }
  0xd7   : > { %v370_v44 = vmul.f32 0.70710677, %v1037_v42  ;;  %v369_v27 = vmul.f32 0.5, %v1037_v42 }
  0xd9   : > { %v371_v46 = vmul.f32 %v370_v44, %v370_v44 }
  0xdb   : > { %v372_v48 = vmin.f32 %v371_v46, 16.0 }
  0xdd   : > { %v373_v50 = vmul.f32 2.1237322e-06, %v372_v48  ;;  %v384_v51 = vmul.f32 3.8918573e-05, %v372_v48 }
  0xdf   : > { %v374_v53 = vadd.f32 0.00028619796, %v373_v50  ;;  %v385_v54 = vadd.f32 0.001143296, %v384_v51 }
  0xe1   : > { %v375_v56 = vmul.f32 %v374_v53, %v372_v48  ;;  %v386_v57 = vmul.f32 %v385_v54, %v372_v48 }
  0xe3   : > { %v387_v59 = vadd.f32 0.014752088, %v386_v57  ;;  %v376_v60 = vadd.f32 0.0036580483, %v375_v56 }
  0xe5   : > { %v388_v62 = vmul.f32 %v387_v59, %v372_v48  ;;  %v377_v1 = vmul.f32 %v376_v60, %v372_v48 }
  0xe7   : > { %v389_v0 = vadd.f32 0.112945676, %v388_v62  ;;  %v378_v5 = vadd.f32 0.05243302, %v377_v1 }
  0xe9   : > { %v390_v3 = vmul.f32 %v389_v0, %v372_v48  ;;  %v379_v8 = vmul.f32 %v378_v5, %v372_v48 }
  0xeb   : > { %v391_v4 = vadd.f32 0.4994258, %v390_v3  ;;  %v380_v9 = vadd.f32 0.18741608, %v379_v8 }
  0xed   : > { %v392_v6 = vmul.f32 %v391_v4, %v372_v48  ;;  %v381_v11 = vmul.f32 %v380_v9, %v372_v48 }
  0xef   : > { %v393_v7 = vadd.f32 1.0, %v392_v6  ;;  %v382_v15 = vadd.f32 1.1283791, %v381_v11 }
  0xf1   : > { %671 = vrcp.f32 %v393_v7  ;;  %v405_v14 = vand.u32 2147483648, %v393_v7  ;;  %v403_v17 = vand.u32 2147483647, %v393_v7  ;;  %vm399_vm1 = vweird.f32 %v393_v7 }
  0xf2   : > { %v383_v20 = vmul.f32 %v382_v15, %v370_v44 }
  0xf3   : > { %v406_v19 = vor.u32 1.1754944e-38, %v405_v14  ;;  %vm404_vm3 = vcmp.eq.f32.partialorder %v403_v17, 8.507059e+37 }
  0xf7   : > { %v672_v10 = vpop.eup %671 }
  0xf8   : > { %v395_v12 = vmul.f32 %v672_v10, %v393_v7  ;;  %vm400_vm0 = vweird.f32 %v672_v10 }
  0xf9   : > { %vm401_vm2 = vmor %vm399_vm1, %vm400_vm0 }
  0xfa   : > { %v396_v13 = vsub.f32 1.0, %v395_v12 }
  0xfc   : > { %v397_v16 = vmul.f32 %v672_v10, %v396_v13 }
  0xfe   : > { %v398_v18 = vadd.f32 %v672_v10, %v397_v16 }
 0x100   : > { %v402_v21 = vsel %vm401_vm2, %v672_v10, %v398_v18 }
 0x101   : > { %v407_v22 = vsel %vm404_vm3, %v406_v19, %v402_v21 }
 0x102   : > { %v408_v24 = vmul.f32 %v407_v22, %v383_v20 }
 0x104   : > { %v584_v26 = vclamps-f32 %v408_v24, 1.0 }
 0x106   : > { %v411_v29 = vadd.f32 1.0, %v584_v26 }
 0x108   : > { %v412_v30 = vmul.f32 %v411_v29, %v369_v27 }
 0x10a   : > { %v413_v31 = vmul.f32 %v412_v30, %v347_v28 }
 0x10c   : > { %450 = vmatmul.f32.vlgmr.msra.gmra.mxu2 %v413_v31 }
 0x18f   : > { %v451_v33 = vpop.f32.mrf.mxu2 }
 0x190   : > { %v452_v34 = vadd.f32 %v670_v32, %v451_v33 }
 0x192   : > { %454 = vst [vmem:[%s289_s27] sm:$0xff] %v452_v34 }
 0x193   : > { %820 = shalt.err (!%p817_p9)
}
 0x194   : > { %603 = dma.vmem_to_hbm [thread:$0]  (%p982_p13), %s469_s28, 128, %s471_s10, %s456_s9  }
 0x195 PF: > { %s482_s7 = sand.u32 1, %s855_s18   ;;  %p1092_p10 = scmp.ge.s32.totalorder %s867_s21, 2 }
 0x196   : > { %s483_s30 = scalar_lea.sflag [#allocation4], %s482_s7 }
 0x197   : > { %p620_p11 = pnand %p1092_p10, %p987_p4 }
 0x199   : > { %p621_p0 = pneg %p620_p11 }
 0x19b   : > { %850 = dma.done.wait (%p621_p0), %s483_s30, 128  }
 0x19c   : > { %852 = vsyncadd (%p621_p0), %s483_s30, 4294967168  ;;  %p20_p2 = scmp.ge.s32.totalorder %s962_s24, 4   ;;  %s1093_s18 = smov %s859_s19 }
 0x19d   : > { %s1094_s19 = smov %s863_s20  ;;  %s1095_s20 = smov %s974_s29 }
 0x19e   : > { %s1096_s21 = smov %s962_s24  ;;  %22 = sbr.rel (!%p20_p2) target bundleno = 7 (0x7), region = 97 }
 0x1a3   :  { %489 = vsyncpa [#allocation3], 1 }
 0x1a4   :  { %491 = vsyncpa [#allocation3 + $0x1], 1 }
 0x1a5   :  { %492 = vsyncpa [#allocation6], 1 }
 0x1a6   :  { %493 = vsyncpa [#allocation9], 1 }
 0x1a7   :  { %494 = vsyncpa [#allocation4], 1 }
 0x1a8   :  { %496 = vsyncpa [#allocation4 + $0x1], 1 }

</bundles_post_ra>
